<compile_context>
chip_gen: v7x
topology: tpu7x:2x2x1
jax: 0.10.0
libtpu: 0.0.40
codegen_flags: <defaults>
</compile_context>

<pallas_src>
import numpy as np
import jax
import jax.numpy as jnp
from jax import lax
from jax.experimental import pallas as pl
from jax.experimental.pallas import tpu as pltpu


# ---------------- wave (coordinate) feature construction (glue) -------------
def make_wave_extras(H, W):
    """features='wave', eval mode (xOffset = yOffset = 0). Returns numpy (9,H,W)."""
    numChX, numChY = 5, 4
    minCycle, maxCycleX, maxCycleY = 16, 1000, 700
    cycleStepX = (maxCycleX - minCycle) / (numChX - 1) ** 2  # 61.5
    cycleStepY = (maxCycleY - minCycle) / (numChY - 1) ** 2  # 76.0
    x_range = np.arange(W, dtype=np.float64)
    y_range = np.arange(H, dtype=np.float64)
    extraX = np.stack(
        [np.sin(x_range * np.pi * 2.0 / (minCycle + cycleStepX * i ** 2))
         for i in range(numChX)]).astype(np.float32)                  # (5, W)
    extraY = np.stack(
        [np.sin(y_range * np.pi * 2.0 / (minCycle + cycleStepY * i ** 2))
         for i in range(numChY)]).astype(np.float32)                  # (4, H)
    extraX = np.broadcast_to(extraX[:, None, :], (numChX, H, W))
    extraY = np.broadcast_to(extraY[:, :, None], (numChY, H, W))
    extra = np.concatenate([extraY, extraX], axis=0)                  # (9, H, W)
    return extra, numChX + numChY


def make_wave_patches(extra_np, H, W):
    """im2col of the constant wave channels, plus a trailing ones row (bias).

    Row ordering matches lax.conv_general_dilated_patches / OIHW weight
    flattening: row index = c * 9 + kh * 3 + kw.  Shape: (9*num_extra + 1, H*W).
    """
    num_extra = extra_np.shape[0]
    padded = np.pad(extra_np, ((0, 0), (1, 1), (1, 1)))               # zero pad=1
    rows = []
    for c in range(num_extra):
        for kh in range(3):
            for kw in range(3):
                rows.append(padded[c, kh:kh + H, kw:kw + W].reshape(-1))
    rows.append(np.ones(H * W, dtype=np.float32))                     # bias row
    return np.stack(rows).astype(np.float32)


# --------- one-time check of conv_general_dilated_patches row order ---------
_PATCH_ORDER_CHECKED = False


def _check_patch_row_order():
    """Verify patch rows come out channel-major then (kh, kw): row = c*9+kh*3+kw."""
    global _PATCH_ORDER_CHECKED
    if _PATCH_ORDER_CHECKED:
        return
    Ct, Ht, Wt = 2, 4, 5
    x = np.arange(Ct * Ht * Wt, dtype=np.float32).reshape(1, Ct, Ht, Wt)
    pat = np.asarray(lax.conv_general_dilated_patches(
        jnp.asarray(x), filter_shape=(3, 3), window_strides=(1, 1),
        padding=((1, 1), (1, 1)),
        dimension_numbers=("NCHW", "OIHW", "NCHW")))         # (1, Ct*9, Ht, Wt)
    padded = np.pad(x[0], ((0, 0), (1, 1), (1, 1)))
    rows = np.stack([padded[c, kh:kh + Ht, kw:kw + Wt]
                     for c in range(Ct) for kh in range(3) for kw in range(3)])
    np.testing.assert_allclose(pat.reshape(Ct * 9, Ht, Wt), rows)
    _PATCH_ORDER_CHECKED = True


# ---------------------------- Pallas conv kernel ----------------------------
def _coordconv_kernel(xin_ref, wave_bias_ref, w_in_ref, o_ref):
    # xin_ref:       (Btile, K_IN, HW_TILE)  im2col patches of the real input channels
    # wave_bias_ref: (OC, HW_TILE)           precomputed wave-channels + bias slab
    # w_in_ref:      (OC, K_IN)              weights for the real input channels
    # o_ref:         (Btile, OC, HW_TILE)    lane-dense output (HW on lanes, OC sublanes)
    w = w_in_ref[...]
    wb = wave_bias_ref[...]
    for b in range(o_ref.shape[0]):          # static Btile, unrolled at trace time
        acc = jnp.dot(w, xin_ref[b], preferred_element_type=jnp.float32)
        o_ref[b] = (acc + wb).astype(o_ref.dtype)


def _pick_hw_tile(HW, target=2048):
    """Whole image when small; otherwise the largest lane-dense divisor <= target."""
    if HW <= target:
        return HW
    t = (target // 128) * 128
    while t >= 128:
        if HW % t == 0:
            return t
        t -= 128
    return HW


def coordconv_forward(x_nchw, weight_oihw, bias):
    """CoordConv forward (features='wave', eval mode). x_nchw: (B, in_ch, H, W) f32."""
    _check_patch_row_order()
    B, in_ch, H, W = x_nchw.shape
    OC = weight_oihw.shape[0]
    HW = H * W

    # ---- batch-invariant wave contribution, precomputed once per call ------
    extra, num_extra = make_wave_extras(H, W)                  # numpy (9, H, W)
    wave_pat = jnp.asarray(make_wave_patches(extra, H, W))     # (9*9+1, HW)
    w_wv = jnp.concatenate(
        [weight_oihw[:, in_ch:].reshape(OC, num_extra * 9),
         bias.reshape(OC, 1)], axis=1)                         # (OC, 82), bias last col
    wave_bias = jnp.dot(w_wv, wave_pat,
                        precision=lax.Precision.HIGHEST)       # (OC, HW) additive slab

    # ---- im2col of the real input channels (row = c*9 + kh*3 + kw) ---------
    xin_pat = lax.conv_general_dilated_patches(
        x_nchw, filter_shape=(3, 3), window_strides=(1, 1),
        padding=((1, 1), (1, 1)),
        dimension_numbers=("NCHW", "OIHW", "NCHW"))
    K_IN = in_ch * 9                                           # 36
    xin_pat = xin_pat.reshape(B, K_IN, HW)
    w_in = weight_oihw[:, :in_ch].reshape(OC, K_IN)            # (OC, 36)

    # ---- grid / tile selection ----------------------------------------------
    HW_TILE = _pick_hw_tile(HW)
    n_hw = HW // HW_TILE
    MAX_BTILE = 8
    if n_hw >= 2:
        Btile = min(B, MAX_BTILE)               # hw axis already gives >=2 steps
    else:
        Btile = min(max(1, B // 2), MAX_BTILE)  # keep >=2 batch steps when B >= 2 (v7x)
    while B % Btile != 0:                       # keep blocks exact (no ragged tail)
        Btile -= 1
    n_b = B // Btile

    # ---- explicit VMEM budget when blocks are large (v7x: 64 MiB physical) --
    blk_bytes = 4 * (2 * (Btile * K_IN * HW_TILE + Btile * OC * HW_TILE)  # dbl-buffered
                     + 2 * (OC * HW_TILE + OC * K_IN))
    est_vmem = blk_bytes + (2 << 20)
    vmem_limit = int(est_vmem) if est_vmem > (24 << 20) else None

    out = pl.pallas_call(
        _coordconv_kernel,
        out_shape=jax.ShapeDtypeStruct((B, OC, HW), jnp.float32),
        grid_spec=pltpu.PrefetchScalarGridSpec(
            num_scalar_prefetch=0,
            grid=(n_b, n_hw),
            in_specs=[
                pl.BlockSpec((Btile, K_IN, HW_TILE), lambda b, h: (b, 0, h)),
                pl.BlockSpec((OC, HW_TILE), lambda b, h: (0, h)),   # batch-invariant
                pl.BlockSpec((OC, K_IN), lambda b, h: (0, 0)),      # grid-invariant
            ],
            out_specs=pl.BlockSpec((Btile, OC, HW_TILE), lambda b, h: (b, 0, h)),
        ),
        compiler_params=pltpu.CompilerParams(
            dimension_semantics=("parallel", "parallel"),
            vmem_limit_bytes=vmem_limit),
    )(xin_pat, wave_bias, w_in)

    # Output already NCHW-ordered: just fold HW back to (H, W).
    return out.reshape(B, OC, H, W)


# ------------------------------ reference (glue) ----------------------------
def coordconv_reference(x_nchw, weight_oihw, bias):
    B, in_ch, H, W = x_nchw.shape
    extra, num_extra = make_wave_extras(H, W)
    extra_b = jnp.broadcast_to(jnp.asarray(extra)[None], (B, num_extra, H, W))
    data = jnp.concatenate([x_nchw, extra_b], axis=1)
    out = lax.conv_general_dilated(
        data, weight_oihw, window_strides=(1, 1), padding=((1, 1), (1, 1)),
        dimension_numbers=("NCHW", "OIHW", "NCHW"))
    return out + bias[None, :, None, None]


if __name__ == "__main__":
    key = jax.random.PRNGKey(0)
    B, in_ch, H, W = 2, 4, 16, 16
    out_ch = 8
    num_extra = 9                      # numChX(5) + numChY(4) for 'wave'
    C = in_ch + num_extra

    k_x, k_w, k_b = jax.random.split(key, 3)
    x = jax.random.normal(k_x, (B, in_ch, H, W), dtype=jnp.float32)

    # Deterministic Conv2d-style init (kaiming-uniform-like bounds)
    fan_in = C * 3 * 3
    bound = 1.0 / np.sqrt(fan_in)
    weight = jax.random.uniform(k_w, (out_ch, C, 3, 3), dtype=jnp.float32,
                                minval=-bound, maxval=bound)
    bias = jax.random.uniform(k_b, (out_ch,), dtype=jnp.float32,
                              minval=-bound, maxval=bound)

    out = coordconv_forward(x, weight, bias)
    out = jax.block_until_ready(out)

    ref = jax.block_until_ready(coordconv_reference(x, weight, bias))
    assert out.shape == (B, out_ch, H, W)
    np.testing.assert_allclose(np.asarray(out), np.asarray(ref),
                               rtol=1e-4, atol=1e-4)
    print("KERNEL_OK")
</pallas_src>

<mosaic_0001>
module attributes {stable_mosaic.version = 11 : i64} {
  func.func @_coordconv_kernel(%arg0: i32, %arg1: i32, %arg2: memref<1x36x256xf32, #tpu.memory_space<vmem>>, %arg3: memref<8x256xf32, #tpu.memory_space<vmem>>, %arg4: memref<8x36xf32, #tpu.memory_space<vmem>>, %arg5: memref<1x8x256xf32, #tpu.memory_space<vmem>>) attributes {dimension_semantics = [#tpu.dimension_semantics<parallel>, #tpu.dimension_semantics<parallel>], iteration_bounds = array<i64: 2, 1>, scalar_prefetch = 0 : i64, scratch_operands = 0 : i64, tpu.core_type = #tpu.core_type<tc>, window_params = [{transform_indices = @transform_0, window_bounds = array<i64: 1, 36, 256>}, {transform_indices = @transform_1, window_bounds = array<i64: 8, 256>}, {pipeline_mode = #tpu.pipeline_mode<synchronous>, transform_indices = @transform_2, window_bounds = array<i64: 8, 36>}, {transform_indices = @transform_3, window_bounds = array<i64: 1, 8, 256>}]} {
    %c0 = arith.constant 0 : index
    %c0_0 = arith.constant 0 : index
    %0 = vector.load %arg4[%c0, %c0_0] : memref<8x36xf32, #tpu.memory_space<vmem>>, vector<8x36xf32>
    %c0_1 = arith.constant 0 : index
    %c0_2 = arith.constant 0 : index
    %1 = vector.load %arg3[%c0_1, %c0_2] : memref<8x256xf32, #tpu.memory_space<vmem>>, vector<8x256xf32>
    %c0_3 = arith.constant 0 : index
    %c0_4 = arith.constant 0 : index
    %c0_5 = arith.constant 0 : index
    %2 = vector.load %arg2[%c0_3, %c0_4, %c0_5] : memref<1x36x256xf32, #tpu.memory_space<vmem>>, vector<1x36x256xf32>
    %3 = vector.shape_cast %2 : vector<1x36x256xf32> to vector<36x256xf32>
    %cst = arith.constant dense<0.000000e+00> : vector<8x256xf32>
    %4 = tpu.matmul %0, %3, %cst {dimension_numbers = #tpu.dot_dimension_numbers<[1], [0], [0], [1], [0, 0, 1, 1], [], []>} : vector<8x36xf32>, vector<36x256xf32>, vector<8x256xf32> -> vector<8x256xf32>
    %5 = arith.addf %4, %1 : vector<8x256xf32>
    %c0_6 = arith.constant 0 : index
    %c0_7 = arith.constant 0 : index
    %c0_8 = arith.constant 0 : index
    %6 = vector.load %arg5[%c0_6, %c0_7, %c0_8] : memref<1x8x256xf32, #tpu.memory_space<vmem>>, vector<1x8x256xf32>
    %7 = vector.shape_cast %6 : vector<1x8x256xf32> to vector<8x256xf32>
    %8 = vector.shape_cast %5 : vector<8x256xf32> to vector<1x8x256xf32>
    tpu.vector_store %arg5[%c0_6, %c0_7, %c0_8], %8 {strides = array<i32>} : memref<1x8x256xf32, #tpu.memory_space<vmem>>, vector<1x8x256xf32>,
    return
  }
  func.func @transform_0(%arg0: i32, %arg1: i32) -> (i32, i32, i32) {
    %c0_i32 = arith.constant 0 : i32
    %c0_i32_0 = arith.constant 0 : i32
    return %arg0, %c0_i32, %arg1 : i32, i32, i32
  }
  func.func @transform_1(%arg0: i32, %arg1: i32) -> (i32, i32) {
    %c0_i32 = arith.constant 0 : i32
    %c0_i32_0 = arith.constant 0 : i32
    return %c0_i32, %arg1 : i32, i32
  }
  func.func @transform_2(%arg0: i32, %arg1: i32) -> (i32, i32) {
    %c0_i32 = arith.constant 0 : i32
    %c0_i32_0 = arith.constant 0 : i32
    %c0_i32_1 = arith.constant 0 : i32
    return %c0_i32, %c0_i32_0 : i32, i32
  }
  func.func @transform_3(%arg0: i32, %arg1: i32) -> (i32, i32, i32) {
    %c0_i32 = arith.constant 0 : i32
    %c0_i32_0 = arith.constant 0 : i32
    return %arg0, %c0_i32, %arg1 : i32, i32, i32
  }
}

</mosaic_0001>

<bundles_post_ra>
// kernel: tpu_custom_call.1
= control target key start
LH: loop header
LB: loop body
LE: loop exit
PB: predicated region body
PF: predicated region fallthrough
CT: control target
= control target key end

     0   :  { %8 = vsyncpa [#allocation3], 0  ;;  %s732_s0 = inlined_call_operand.vmem [shape: f32[2,36,256], index: 0, kind: input, shape index: {}]   ;;  %s733_s1 = inlined_call_operand.vmem [shape: f32[8,256], index: 1, kind: input, shape index: {}]   ;;  %s734_s2 = inlined_call_operand.vmem [shape: f32[8,36], index: 2, kind: input, shape index: {}]   ;;  %s735_s3 = inlined_call_operand.hbm [shape: f32[2,8,256], index: 3, kind: output, shape index: {}]  }
   0x1   :  { %10 = vsyncpa [#allocation3 + $0x1], 0  ;;  %s611_s12 = smov 0   ;;  %s613_s13 = smov 0  }
   0x2   :  { %s615_s14 = smov 0   ;;  %s617_s15 = smov 0  }
   0x3   :  { %s619_s16 = smov 0   ;;  %s621_s17 = smov 0  }
   0x4 LB: > { %s427_s18 = sadd.s32 4294967295, %s587_s17   ;;  %s428_s19 = sadd.s32 4294967294, %s587_s17   ;;  %s587_s17 = sphi %s621_s17, %s16_s17   ;;  %s583_s16 = sphi %s619_s16, %s742_s16   ;;  %s579_s15 = sphi %s617_s15, %s741_s15   ;;  %s575_s14 = sphi %s615_s14, %s740_s14   ;;  %s571_s13 = sphi %s613_s13, %s739_s13   ;;  %s567_s12 = sphi %s611_s12, %s738_s12  }
   0x5   : > { %s28_s20 = sadd.s32 1, %s583_s16  ;;  %s112_s21 = sadd.s32 1, %s575_s14 }
   0x6   : > { %p30_p0 = scmp.ge.s32.totalorder %s28_s20, 2  ;;  %p122_p1 = scmp.ne.s32.totalorder %s575_s14, %s571_s13 }
   0x7   : > { %p123_p2 = scmp.eq.s32.totalorder %s427_s18, 1  ;;  %p128_p3 = scmp.ne.s32.totalorder %s571_s13, %s567_s12 }
   0x8   : > { %s744_s20 = smov (%p30_p0, %s28_s20), 0  ;;  %p129_p5 = scmp.eq.s32.totalorder %s428_s19, 1 }
   0x9   : > { %p651_p4 = por %p123_p2, %p122_p1  ;;  %s107_s23 = ssub.s32 %s583_s16, %s744_s20 }
   0xa   : > { %p432_p6 = scmp.ge.s32.totalorder %s587_s17, 1  ;;  %p110_p7 = scmp.eq.s32.totalorder %s107_s23, 0 }
   0xb   : > { %p658_p8 = por %p129_p5, %p128_p3  ;;  %p172_p9 = scmp.lt.s32.totalorder %s587_s17, 3 }
   0xc   : > { %s664_s25 = scalar_select %p110_p7, %s575_s14, %s112_s21  }
   0xd   : > { %p173_p10 = pnand %p432_p6, %p172_p9 }
   0xe   : > { %p206_p11 = scmp.lt.s32.totalorder (!%p173_p10), %s579_s15, 1  ;;  %v589_v0 = vmov (!%p173_p10), 0.0   ;;  %vm239_vm0 = vcmask (!%p173_p10), 1043456   ;;  %v222_v15 = vld [vmem:[%s734_s2] sm:$0xff] (!%p173_p10)  ;;  %vm235_vm1 = vcmask (!%p173_p10), 293888   ;;  %s202_s6 = sand.u32 (!%p173_p10), 1, %s571_s13  }
   0xf   : > { %176 = sbr.rel (%p173_p10) target bundleno = 269 (0x10d), region = 32  ;;  %310 = vmatprep.mubr.f32.mxu0 (!%p173_p10), %v589_v0  ;;  %s433_s7 = sshll.u32 (!%p173_p10), %s202_s6, 4  ;;  %v223_v16 = vld [vmem:[%s733_s1] sm:$0xff] (!%p173_p10)  ;;  %v224_v17 = vld [vmem:[%s733_s1 + $0x8] sm:$0xff] (!%p173_p10) }
  0x10   : > { %s443_s18 = sshll.u32 (!%p173_p10), %s579_s15, 8  ;;  %s204_s19 = scalar_lea.vmem (!%p173_p10), [#allocation2], %s433_s7 }
  0x11   : > { %s336_s21 = sshll.u32 (!%p173_p10), %s204_s19, 4  ;;  %s320_s28 = scalar_lea.sflag (!%p173_p10), [#allocation3], %s202_s6  ;;  %s687_s21 = int_to_ptr.vmem [resolvable:$true] %s336_s21 }
  0x12   : > { %s590_s29 = smov (!%p173_p10), [#allocation2]  }
  0x16   : > { %s207_s26 = scalar_select %p206_p11, %s579_s15, 1 }
  0x17   : > { %s509_s15 = scalar_lea.vmem %s687_s21, 256 }
  0x18   : > { %s452_s27 = smul.u32 80, %s207_s26  ;;  %p510_p12 = scmp.ne.s32.totalorder %s687_s21, %s509_s15 }
  0x1a   : > { %s213_s30 = scalar_lea.vmem %s732_s0, %s452_s27  ;;  %s685_s27 = scalar_lea.hbm %s735_s3, %s443_s18 }
  0x1b   : > { %v226_v1 = vld [vmem:[%s213_s30 + $0x8] sm:$0xff]  ;;  %v228_v2 = vld [vmem:[%s213_s30 + $0x18] sm:$0xff]  ;;  %v225_v3 = vld [vmem:[%s213_s30] sm:$0xff]  ;;  %p511_p13 = pnand %p510_p12, %p651_p4 }
  0x1c   : > { %v444_v4 = vpack.c.bf16 %v228_v2, %v226_v1  ;;  %v227_v5 = vld [vmem:[%s213_s30 + $0x10] sm:$0xff]  ;;  %v230_v6 = vld [vmem:[%s213_s30 + $0x28] sm:$0xff]  ;;  %v232_v7 = vld [vmem:[%s213_s30 + $0x38] sm:$0xff] }
  0x1d   : > { %v446_v8 = vpack.c.bf16 %v227_v5, %v225_v3  ;;  %v448_v9 = vpack.c.bf16 %v232_v7, %v230_v6  ;;  %v229_v10 = vld [vmem:[%s213_s30 + $0x20] sm:$0xff]  ;;  %v231_v11 = vld [vmem:[%s213_s30 + $0x30] sm:$0xff]  ;;  %v234_v13 = vld [vmem:[%s213_s30 + $0x48] sm:$0xf]  ;;  %p512_p0 = pneg %p511_p13 }
  0x1e   : > { %445 = vmatprep.subr.bf16.mxu0 %v444_v4  ;;  %v450_v12 = vpack.c.bf16 %v231_v11, %v229_v10  ;;  %v233_v14 = vld [vmem:[%s213_s30 + $0x40] sm:$0xf]  ;;  %s513_s30 = sshll.u32 %s590_s29, 4  ;;  %s514_s30 = int_to_ptr.vmem [resolvable:$false] %s513_s30 }
  0x1f   : > { %447 = vmatpush1.bf16.msra.mxu0 %v446_v8  ;;  %s515_s4 = scalar_lea.vmem %s514_s30, 512  ;;  %p516_p1 = scmp.lt.s32.totalorder %s687_s21, %s514_s30 }
  0x20   : > { %449 = vmatprep.subr.bf16.mxu0 %v448_v9  ;;  %p517_p2 = scmp.lt.s32.totalorder %s515_s4, %s509_s15 }
  0x22   : > { %p518_p3 = por %p517_p2, %p516_p1 }
  0x23   : > { %451 = vmatpush1.bf16.msra.mxu0 %v450_v12 }
  0x24   : > { %435 = vmatprep.subr.msk.mxu0 %vm239_vm0, %v234_v13  ;;  %p519_p5 = pnand %p518_p3, %p512_p0 }
  0x27   : > { %436 = vmatpush1.msk.msra.mxu0 %vm239_vm0, %v233_v14 }
  0x28   : > { %437 = vmatmul.mubr.msk.f32.vlgmr.msra.gmra.mrb[0].mxu0 %vm235_vm1, %v222_v15 }
  0xfb   : > { %v312_v18 = vpop.f32.mrb[0].mxu0 }
  0xfc   : > { %v313_v19 = vadd.f32 %v312_v18, %v223_v16  ;;  %v314_v20 = vpop.f32.mrb[1].mxu0 }
  0xfd   : > { %v315_v21 = vadd.f32 %v314_v20, %v224_v17 }
  0xfe   : > { %317 = vst [vmem:[%s204_s19] sm:$0xff] %v313_v19 }
  0xff   : > { %318 = vst [vmem:[%s204_s19 + $0x8] sm:$0xff] %v315_v21 }
 0x100   : > { %522 = shalt.err (!%p519_p5)
}
 0x101   : > { %s523_s5 = scalar_lea.hbm %s685_s27, 256  ;;  %s527_s8 = scalar_lea.hbm %s735_s3, 512 }
 0x102   : > { %p524_p6 = scmp.ne.s32.totalorder %s685_s27, %s523_s5  ;;  %p528_p10 = scmp.lt.u32.totalorder %s685_s27, %s735_s3 }
 0x103   : > { %p529_p11 = scmp.lt.u32.totalorder %s527_s8, %s523_s5  ;;  %p531_p13 = scmp.lt.u32.totalorder %s523_s5, %s685_s27 }
 0x104   : > { %p525_p7 = pnand %p524_p6, %p651_p4 }
 0x105   : > { %p530_p12 = por %p529_p11, %p528_p10 }
 0x106   : > { %p526_p9 = pneg %p525_p7 }
 0x107   : > { %p532_p0 = por %p531_p13, %p530_p12 }
 0x109   : > { %p533_p1 = pnand %p532_p0, %p526_p9 }
 0x10b   : > { %536 = shalt.err (!%p533_p1)
}
 0x10c   : > { %453 = dma.vmem_to_hbm [thread:$0]  (%p651_p4), %s687_s21, 256, %s685_s27, %s320_s28  }
 0x10d PF: > { %p459_p2 = scmp.ge.s32.totalorder %s587_s17, 2  ;;  %s348_s11 = sand.u32 1, %s567_s12  }
 0x10e   : > { %s349_s18 = scalar_lea.sflag [#allocation3], %s348_s11 }
 0x10f   : > { %p456_p3 = pnand %p459_p2, %p658_p8 }
 0x111   : > { %562 = dma.done.wait (!%p456_p3), %s349_s18, 256  }
 0x112   : > { %564 = vsyncadd (!%p456_p3), %s349_s18, 4294967040  ;;  %s16_s17 = sadd.s32 1, %s587_s17   ;;  %s738_s12 = smov %s571_s13 }
 0x113   : > { %p13_p5 = scmp.ge.s32.totalorder %s16_s17, 4   ;;  %s739_s13 = smov %s575_s14 }
 0x114   : > { %s740_s14 = smov %s664_s25  ;;  %s741_s15 = smov %s583_s16 }
 0x115   : > { %s742_s16 = smov %s744_s20  ;;  %15 = sbr.rel (!%p13_p5) target bundleno = 4 (0x4), region = 70 }
 0x11c   :  { %354 = vsyncpa [#allocation3], 1 }
 0x11d   :  { %356 = vsyncpa [#allocation3 + $0x1], 1 }

</bundles_post_ra>
